<compile_context>
chip_gen: v6e
topology: v6e:2x2x1
jax: 0.10.0
libtpu: 0.0.40
codegen_flags: <defaults>
</compile_context>

<pallas_src>
import jax
import jax.numpy as jnp
from jax.experimental import pallas as pl
from jax.experimental.pallas import tpu as pltpu

EPS = 1e-5  # PyTorch BatchNorm1d default eps


def sa_kernel(sc_ref, wpack_ref, aux_ref, out_ref):
    bb, T, D = sc_ref.shape
    sc = sc_ref[...]                               # [bb, T, D]
    sc_flat = sc.reshape(bb * T, D)                # leading-dim collapse (layout-trivial)

    # Single lane-dense MXU projection: [bb*T, 2D] = sc @ [ M | Wv' ] + [ 0 | bv' ]
    proj = jnp.dot(sc_flat, wpack_ref[...], preferred_element_type=jnp.float32)
    proj = proj + aux_ref[0:1, :]

    g = proj[:, :D].reshape(bb, T, D)                          # sc @ M  (0.5 & bn_q folded)
    v = jnp.maximum(proj[:, D:2 * D], 0.0).reshape(bb, T, D)   # relu(bn_v(dense_v(sc)))

    # k/q bias cross-term that varies along the softmax axis: rk[b,t] = sc[b,t,:] . ck
    ck = aux_ref[1:2, 0:D].reshape(1, 1, D)
    rk = jnp.sum(sc * ck, axis=-1, keepdims=True)              # [bb, T, 1]

    # scores[b,t,s] = 0.5 * k_lin[b,t,:] . q_bn[b,s,:]  (algebraically refactored; terms
    # constant along the softmax axis are dropped -- they cancel in the softmax below)
    scores = jnp.einsum("btd,bsd->bts", g, sc,
                        preferred_element_type=jnp.float32) + rk

    # torch.softmax(w, dim=1)  ==  softmax over the t axis
    m = jnp.max(scores, axis=1, keepdims=True)
    e = jnp.exp(scores - m)
    inv = pl.reciprocal(jnp.sum(e, axis=1, keepdims=True))  # approx=False keeps 1e-4 parity
    w_sm = e * inv

    # output[b,t,:] = sum_s w_sm[b,t,s] * v[b,s,:]   (== bmm(w, v.permute(0,2,1)))
    out_ref[...] = jnp.einsum("bts,bsd->btd", w_sm, v,
                              preferred_element_type=jnp.float32)


def _fold_params(p):
    """Fold eval-mode BN into the Linears and fuse k/q into M; pack for the kernel."""
    D = p["wv"].shape[0]
    hi = jax.lax.Precision.HIGHEST

    sq = p["gq"] * jax.lax.rsqrt(p["vq"] + EPS)              # [1, U]
    wq_f = p["wq"] * sq                                      # [D, U]
    bq_f = sq * (p["bq"] - p["mq"]) + p["betaq"]             # [1, U]

    sv = p["gv"] * jax.lax.rsqrt(p["vv"] + EPS)              # [1, D]
    wv_f = p["wv"] * sv                                      # [D, D]
    bv_f = sv * (p["bv"] - p["mv"]) + p["betav"]             # [1, D]

    wk_f = 0.5 * p["wk"]                                     # [D, U]  (the /2 folded in)
    # bk-only terms are constant along the softmax axis and cancel exactly;
    # only the t-dependent cross-term ck = Wk_f @ bq_f^T survives.
    m_kq = jnp.dot(wk_f, wq_f.T, precision=hi)               # [D, D]
    ck = jnp.dot(wk_f, bq_f.T, precision=hi)[:, 0]           # [D]

    w_pack = jnp.concatenate([m_kq, wv_f], axis=1)           # [D, 2D] = [64, 128], lane-dense
    aux = jnp.zeros((8, 2 * D), jnp.float32)                 # one packed f32 vreg of params
    aux = aux.at[0, D:2 * D].set(bv_f[0])                    # value bias
    aux = aux.at[1, 0:D].set(ck)                             # score row bias
    return w_pack, aux


def sa_forward(input_feature_st, input_features_sc, params, *, batch_block=None):
    B, T, D = input_features_sc.shape
    bb = B if batch_block is None else min(batch_block, B)
    assert B % bb == 0, "batch_block must divide the batch size"

    w_pack, aux = _fold_params(params)

    attn_out = pl.pallas_call(
        sa_kernel,
        out_shape=jax.ShapeDtypeStruct((B, T, D), jnp.float32),
        grid=(B // bb,),
        in_specs=[
            pl.BlockSpec((bb, T, D), lambda b: (b, 0, 0)),   # activations (block of batches)
            pl.BlockSpec((D, 2 * D), lambda b: (0, 0)),      # packed [M | Wv'] weight
            pl.BlockSpec((8, 2 * D), lambda b: (0, 0)),      # packed small params
        ],
        out_specs=pl.BlockSpec((bb, T, D), lambda b: (b, 0, 0)),
        compiler_params=pltpu.CompilerParams(
            dimension_semantics=("parallel",)),              # megacore split when B//bb > 1
    )(input_features_sc, w_pack, aux)

    # BN-folded weight norms (glue; the torch code uses sqrt(var) without eps here).
    k_weightNorm = (params["wk"] * (params["gk"] / jnp.sqrt(params["vk"]))).T
    q_weightNorm = (params["wq"] * (params["gq"][0] / jnp.sqrt(params["vq"][0]))).T
    v_weightNorm = (params["wv"] * (params["gv"][0] / jnp.sqrt(params["vv"][0]))).T

    # TODO(synk): SAIF is a custom autograd spiking (integrate-and-fire) op whose
    # definition is not provided; membrane state is passed through unchanged and the
    # attention output is returned in place of the spike train.
    del k_weightNorm, q_weightNorm, v_weightNorm
    return input_feature_st, attn_out


def _reference(sc, p):
    # Pure-JAX reference of the original (un-fused) forward, eval-mode BN.
    k_lin = sc @ p["wk"] + p["bk"]
    q_lin = sc @ p["wq"] + p["bq"]
    q_bn = p["gq"] * (q_lin - p["mq"]) / jnp.sqrt(p["vq"] + EPS) + p["betaq"]
    w = jnp.einsum("btu,bsu->bts", k_lin, q_bn) / 2.0
    w = jax.nn.softmax(w, axis=1)
    v_lin = sc @ p["wv"] + p["bv"]
    v_bn = p["gv"] * (v_lin - p["mv"]) / jnp.sqrt(p["vv"] + EPS) + p["betav"]
    v_act = jnp.maximum(v_bn, 0.0)
    return jnp.einsum("bts,bsd->btd", w, v_act)


if __name__ == "__main__":
    B, T, D, U = 2, 8, 64, 4   # batch, seq, feature (=64 per the module), lstm_units
    ks = jax.random.split(jax.random.PRNGKey(0), 18)

    params = {
        # Linear weights stored transposed: [in, out]
        "wk": jax.random.uniform(ks[0], (D, U), jnp.float32, -0.1, 0.1),
        "bk": jax.random.uniform(ks[1], (1, U), jnp.float32, -0.1, 0.1),
        "wq": jax.random.uniform(ks[2], (D, U), jnp.float32, -0.1, 0.1),
        "bq": jax.random.uniform(ks[3], (1, U), jnp.float32, -0.1, 0.1),
        "wv": jax.random.uniform(ks[4], (D, D), jnp.float32, -0.1, 0.1),
        "bv": jax.random.uniform(ks[5], (1, D), jnp.float32, -0.1, 0.1),
        # bn1d_q affine + running stats
        "gq": jax.random.uniform(ks[6], (1, U), jnp.float32, 0.5, 1.5),
        "betaq": jax.random.uniform(ks[7], (1, U), jnp.float32, -0.1, 0.1),
        "mq": jax.random.uniform(ks[8], (1, U), jnp.float32, -0.1, 0.1),
        "vq": jax.random.uniform(ks[9], (1, U), jnp.float32, 0.5, 1.5),
        # bn1d_v affine + running stats
        "gv": jax.random.uniform(ks[10], (1, D), jnp.float32, 0.5, 1.5),
        "betav": jax.random.uniform(ks[11], (1, D), jnp.float32, -0.1, 0.1),
        "mv": jax.random.uniform(ks[12], (1, D), jnp.float32, -0.1, 0.1),
        "vv": jax.random.uniform(ks[13], (1, D), jnp.float32, 0.5, 1.5),
        # bn1d_k affine/stats (only feed the BN-folded weight norm consumed by SAIF)
        "gk": jax.random.uniform(ks[14], (U,), jnp.float32, 0.5, 1.5),
        "vk": jax.random.uniform(ks[15], (U,), jnp.float32, 0.5, 1.5),
    }

    input_feature_st = jax.random.normal(ks[16], (B, T, D), jnp.float32)
    input_features_sc = jax.random.normal(ks[17], (B, T, D), jnp.float32)

    out_st, out_sc = sa_forward(input_feature_st, input_features_sc, params)
    out_st, out_sc = jax.block_until_ready((out_st, out_sc))

    ref = _reference(input_features_sc, params)
    assert out_sc.shape == (B, T, D)
    max_err = float(jnp.max(jnp.abs(out_sc - ref)))
    assert jnp.allclose(out_sc, ref, atol=1e-4, rtol=1e-4), (
        f"mismatch vs JAX reference (max abs err {max_err:.3e})")

    print("KERNEL_OK")
</pallas_src>

<mosaic_0001>
module attributes {stable_mosaic.version = 11 : i64} {
  func.func @sa_kernel(%arg0: i32, %arg1: memref<2x8x64xf32, #tpu.memory_space<vmem>>, %arg2: memref<64x128xf32, #tpu.memory_space<vmem>>, %arg3: memref<8x128xf32, #tpu.memory_space<vmem>>, %arg4: memref<2x8x64xf32, #tpu.memory_space<vmem>>) attributes {dimension_semantics = [#tpu.dimension_semantics<parallel>], iteration_bounds = array<i64: 1>, scalar_prefetch = 0 : i64, scratch_operands = 0 : i64, tpu.core_type = #tpu.core_type<tc>, window_params = [{transform_indices = @transform_0, window_bounds = array<i64: 2, 8, 64>}, {pipeline_mode = #tpu.pipeline_mode<synchronous>, transform_indices = @transform_1, window_bounds = array<i64: 64, 128>}, {pipeline_mode = #tpu.pipeline_mode<synchronous>, transform_indices = @transform_2, window_bounds = array<i64: 8, 128>}, {transform_indices = @transform_3, window_bounds = array<i64: 2, 8, 64>}]} {
    %c0 = arith.constant 0 : index
    %c0_0 = arith.constant 0 : index
    %c0_1 = arith.constant 0 : index
    %0 = vector.load %arg1[%c0, %c0_0, %c0_1] : memref<2x8x64xf32, #tpu.memory_space<vmem>>, vector<2x8x64xf32>
    %1 = vector.shape_cast %0 : vector<2x8x64xf32> to vector<16x64xf32>
    %c0_2 = arith.constant 0 : index
    %c0_3 = arith.constant 0 : index
    %2 = vector.load %arg2[%c0_2, %c0_3] : memref<64x128xf32, #tpu.memory_space<vmem>>, vector<64x128xf32>
    %cst = arith.constant dense<0.000000e+00> : vector<16x128xf32>
    %3 = tpu.matmul %1, %2, %cst {dimension_numbers = #tpu.dot_dimension_numbers<[1], [0], [0], [1], [0, 0, 1, 1], [], []>} : vector<16x64xf32>, vector<64x128xf32>, vector<16x128xf32> -> vector<16x128xf32>
    %c0_4 = arith.constant 0 : index
    %c0_5 = arith.constant 0 : index
    %4 = vector.load %arg3[%c0_4, %c0_5] : memref<8x128xf32, #tpu.memory_space<vmem>>, vector<1x128xf32>
    %5 = vector.broadcast %4 : vector<1x128xf32> to vector<16x128xf32>
    %6 = arith.addf %3, %5 : vector<16x128xf32>
    %7 = vector.extract_strided_slice %6 {offsets = [0, 0], sizes = [16, 64], strides = [1, 1]} : vector<16x128xf32> to vector<16x64xf32>
    %8 = vector.shape_cast %7 : vector<16x64xf32> to vector<2x8x64xf32>
    %9 = vector.extract_strided_slice %6 {offsets = [0, 64], sizes = [16, 64], strides = [1, 1]} : vector<16x128xf32> to vector<16x64xf32>
    %cst_6 = arith.constant 0.000000e+00 : f32
    %10 = vector.broadcast %cst_6 : f32 to vector<16x64xf32>
    %11 = arith.maximumf %9, %10 : vector<16x64xf32>
    %12 = vector.shape_cast %11 : vector<16x64xf32> to vector<2x8x64xf32>
    %c1 = arith.constant 1 : index
    %c0_7 = arith.constant 0 : index
    %13 = vector.load %arg3[%c1, %c0_7] : memref<8x128xf32, #tpu.memory_space<vmem>>, vector<1x64xf32>
    %14 = vector.shape_cast %13 : vector<1x64xf32> to vector<1x1x64xf32>
    %15 = vector.broadcast %14 : vector<1x1x64xf32> to vector<2x8x64xf32>
    %16 = arith.mulf %0, %15 : vector<2x8x64xf32>
    %cst_8 = arith.constant dense<0.000000e+00> : vector<2x8xf32>
    %17 = vector.multi_reduction <add>, %16, %cst_8 [2] : vector<2x8x64xf32> to vector<2x8xf32>
    %18 = vector.shape_cast %17 : vector<2x8xf32> to vector<2x8x1xf32>
    "tpu.trace_start"() <{level = 10 : i32, message = "btd,bsd->bts"}> : () -> ()
    %cst_9 = arith.constant dense<0.000000e+00> : vector<2x8x8xf32>
    %19 = tpu.matmul %8, %0, %cst_9 {dimension_numbers = #tpu.dot_dimension_numbers<[2], [2], [1], [1], [0, 0, 0, 1, 1, 1], [0], [0]>} : vector<2x8x64xf32>, vector<2x8x64xf32>, vector<2x8x8xf32> -> vector<2x8x8xf32>
    "tpu.trace_stop"() : () -> ()
    %20 = vector.broadcast %18 : vector<2x8x1xf32> to vector<2x8x8xf32>
    %21 = arith.addf %19, %20 : vector<2x8x8xf32>
    %cst_10 = arith.constant dense<0xFF800000> : vector<2x8xf32>
    %22 = vector.multi_reduction <maximumf>, %21, %cst_10 [1] : vector<2x8x8xf32> to vector<2x8xf32>
    %23 = vector.shape_cast %22 : vector<2x8xf32> to vector<2x1x8xf32>
    %24 = vector.broadcast %23 : vector<2x1x8xf32> to vector<2x8x8xf32>
    %25 = arith.subf %21, %24 : vector<2x8x8xf32>
    %26 = math.exp %25 : vector<2x8x8xf32>
    %cst_11 = arith.constant dense<0.000000e+00> : vector<2x8xf32>
    %27 = vector.multi_reduction <add>, %26, %cst_11 [1] : vector<2x8x8xf32> to vector<2x8xf32>
    %28 = vector.shape_cast %27 : vector<2x8xf32> to vector<2x1x8xf32>
    %29 = tpu.reciprocal %28 : vector<2x1x8xf32> -> vector<2x1x8xf32>
    %30 = vector.broadcast %29 : vector<2x1x8xf32> to vector<2x8x8xf32>
    %31 = arith.mulf %26, %30 : vector<2x8x8xf32>
    "tpu.trace_start"() <{level = 10 : i32, message = "bts,bsd->btd"}> : () -> ()
    %cst_12 = arith.constant dense<0.000000e+00> : vector<2x8x64xf32>
    %32 = tpu.matmul %31, %12, %cst_12 {dimension_numbers = #tpu.dot_dimension_numbers<[2], [1], [1], [2], [0, 0, 0, 1, 1, 2], [0], [0]>} : vector<2x8x8xf32>, vector<2x8x64xf32>, vector<2x8x64xf32> -> vector<2x8x64xf32>
    "tpu.trace_stop"() : () -> ()
    %c0_13 = arith.constant 0 : index
    %c0_14 = arith.constant 0 : index
    %c0_15 = arith.constant 0 : index
    %33 = vector.load %arg4[%c0_13, %c0_14, %c0_15] : memref<2x8x64xf32, #tpu.memory_space<vmem>>, vector<2x8x64xf32>
    tpu.vector_store %arg4[%c0_13, %c0_14, %c0_15], %32 {strides = array<i32>} : memref<2x8x64xf32, #tpu.memory_space<vmem>>, vector<2x8x64xf32>,
    return
  }
  func.func @transform_0(%arg0: i32) -> (i32, i32, i32) {
    %c0_i32 = arith.constant 0 : i32
    %c0_i32_0 = arith.constant 0 : i32
    %c0_i32_1 = arith.constant 0 : i32
    return %arg0, %c0_i32, %c0_i32_0 : i32, i32, i32
  }
  func.func @transform_1(%arg0: i32) -> (i32, i32) {
    %c0_i32 = arith.constant 0 : i32
    %c0_i32_0 = arith.constant 0 : i32
    %c0_i32_1 = arith.constant 0 : i32
    return %c0_i32, %c0_i32_0 : i32, i32
  }
  func.func @transform_2(%arg0: i32) -> (i32, i32) {
    %c0_i32 = arith.constant 0 : i32
    %c0_i32_0 = arith.constant 0 : i32
    %c0_i32_1 = arith.constant 0 : i32
    return %c0_i32, %c0_i32_0 : i32, i32
  }
  func.func @transform_3(%arg0: i32) -> (i32, i32, i32) {
    %c0_i32 = arith.constant 0 : i32
    %c0_i32_0 = arith.constant 0 : i32
    %c0_i32_1 = arith.constant 0 : i32
    return %arg0, %c0_i32, %c0_i32_0 : i32, i32, i32
  }
}

</mosaic_0001>

<bundles_post_ra>
// kernel: tpu_custom_call.1
= control target key start
LH: loop header
LB: loop body
LE: loop exit
PB: predicated region body
PF: predicated region fallthrough
CT: control target
= control target key end

     0   :  { %8 = vsyncpa [#allocation3], 0  ;;  %s773_s0 = inlined_call_operand.hbm [shape: f32[2,8,64], index: 0, kind: input, shape index: {}]   ;;  %s774_s1 = inlined_call_operand.hbm [shape: f32[64,128], index: 1, kind: input, shape index: {}]   ;;  %s775_s2 = inlined_call_operand.hbm [shape: f32[8,128], index: 2, kind: input, shape index: {}]   ;;  %s776_s3 = inlined_call_operand.hbm [shape: f32[2,8,64], index: 3, kind: output, shape index: {}]  }
   0x1   :  { %9 = vsyncpa [#allocation6], 0 }
   0x2   :  { %10 = vsyncpa [#allocation4], 0  ;;  %s695_s12 = smov [#allocation5]   ;;  %s696_s14 = smov [#allocation2]  }
   0x3   :  { %s28_s13 = sshll.u32 %s695_s12, 4  ;;  %s16_s15 = sshll.u32 %s696_s14, 4  ;;  %s29_s13 = int_to_ptr.vmem [resolvable:$true] %s28_s13  ;;  %s17_s15 = int_to_ptr.vmem [resolvable:$true] %s16_s15 }
   0x4   :  { %s617_s16 = scalar_lea.vmem %s29_s13, 1024  ;;  %p622_p1 = scmp.lt.s32.totalorder %s29_s13, %s29_s13 }
   0x5   :  { %p618_p0 = scmp.ne.s32.totalorder %s29_s13, %s617_s16  ;;  %p623_p2 = scmp.lt.s32.totalorder %s617_s16, %s617_s16 }
   0x7   :  { %p624_p3 = por %p623_p2, %p622_p1 }
   0x9   :  { %p625_p4 = pnand %p624_p3, %p618_p0 }
   0xb   :  { %628 = shalt.err (!%p625_p4)
}
   0xc   :  { %s697_s17 = smov 128   ;;  %s698_s18 = smov 8  }
   0xd   :  { %34 = dma.hbm_to_vmem [thread:$0]  %s774_s1, 1024, %s29_s13, [#allocation6], %s697_s17, %s697_s17, %s698_s18  }
   0xe   :  { %s637_s21 = scalar_lea.vmem %s17_s15, 256  ;;  %p642_p6 = scmp.lt.s32.totalorder %s17_s15, %s17_s15 }
   0xf   :  { %p638_p5 = scmp.ne.s32.totalorder %s17_s15, %s637_s21  ;;  %p643_p7 = scmp.lt.s32.totalorder %s637_s21, %s637_s21 }
  0x11   :  { %p644_p8 = por %p643_p7, %p642_p6 }
  0x13   :  { %p645_p9 = pnand %p644_p8, %p638_p5 }
  0x15   :  { %648 = shalt.err (!%p645_p9)
}
  0x16   :  { %22 = dma.hbm_to_vmem [thread:$0]  %s773_s0, 256, %s17_s15, [#allocation3], %s697_s17, %s697_s17, %s698_s18  }
  0x17   :  { %s699_s24 = smov [#allocation7]  }
  0x18   :  { %s41_s25 = sshll.u32 %s699_s24, 4  ;;  %s42_s25 = int_to_ptr.vmem [resolvable:$true] %s41_s25 }
  0x19   :  { %s657_s26 = scalar_lea.vmem %s42_s25, 128  ;;  %p662_p11 = scmp.lt.s32.totalorder %s42_s25, %s42_s25 }
  0x1a   :  { %p658_p10 = scmp.ne.s32.totalorder %s42_s25, %s657_s26  ;;  %p663_p12 = scmp.lt.s32.totalorder %s657_s26, %s657_s26 }
  0x1c   :  { %p664_p13 = por %p663_p12, %p662_p11 }
  0x1e   :  { %p665_p0 = pnand %p664_p13, %p658_p10 }
  0x20   :  { %668 = shalt.err (!%p665_p0)
}
  0x21   :  { %44 = dma.hbm_to_vmem [thread:$0]  %s775_s2, 128, %s42_s25, [#allocation6]  }
  0x22   :  { %689 = dma.done.wait [#allocation3], 256  }
  0x23   :  { %690 = vsyncadd [#allocation3], 4294967040 }
  0x24   :  { %691 = dma.done.wait [#allocation6], 1152  }
  0x25   :  { %692 = vsyncadd [#allocation6], 4294966144  ;;  %v63_v0 = vld [vmem:[#allocation5 + $0x38] sm:$0xff]  ;;  %v62_v1 = vld [vmem:[#allocation5 + $0x30] sm:$0xff]  ;;  %vm69_vm0 = vcmask 523264   ;;  %v700_v10 = vmov 0.0  }
  0x26   :  { %553 = vmatprep.subr.mxu0 %v63_v0  ;;  %v61_v2 = vld [vmem:[#allocation5 + $0x28] sm:$0xff]  ;;  %v54_v3 = vld [vmem:[#allocation2] sm:$0xff]  ;;  %v60_v4 = vld [vmem:[#allocation5 + $0x20] sm:$0xff]  ;;  %572 = vmatprep.subr.mxu1 %v700_v10  ;;  %vm701_vm1 = vmmov 0   ;;  %s702_s0 = smov 64   ;;  %vm312_vm2 = vcmask 64512  }
  0x27   :  { %554 = vmatpush3.msra.mxu0 %v63_v0  ;;  %569 = vmatprep.mubr.msk.f32.mxu0 %vm69_vm0, %v54_v3  ;;  %v59_v5 = vld [vmem:[#allocation5 + $0x18] sm:$0xff]  ;;  %v58_v6 = vld [vmem:[#allocation5 + $0x10] sm:$0xff]  ;;  %v57_v7 = vld [vmem:[#allocation5 + $0x8] sm:$0xff]  ;;  %s703_s2 = smov [#allocation8]  }
  0x28   :  { %555 = vmatprep.subr.mxu0 %v62_v1  ;;  %v56_v8 = vld [vmem:[#allocation5] sm:$0xff]  ;;  %v55_v9 = vld [vmem:[#allocation2 + $0x8] sm:$0xff]  ;;  %573 = vmatpush3.xpose.msk.msra.mxu1 %vm69_vm0, %v54_v3  ;;  %s512_s28 = sshll.u32 %s703_s2, 4  ;;  %s513_s28 = int_to_ptr.vmem [resolvable:$true] %s512_s28 }
  0x29   :  { %556 = vmatpush3.msra.mxu0 %v62_v1  ;;  %577 = vmatprep.subr.mxu1 %v700_v10  ;;  %v528_v11 = vld [vmem:[#allocation7 + $0x1] ss:$0 sm:$0xff]  ;;  %v525_v17 = vld [vmem:[#allocation7] ss:$0 sm:$0xff]  ;;  %s669_s29 = scalar_lea.vmem %s513_s28, 256  ;;  %p674_p2 = scmp.lt.s32.totalorder %s513_s28, %s513_s28 }
  0x2a   :  { %557 = vmatprep.subr.mxu0 %v61_v2  ;;  %574 = vmatprep.mubr.msk.f32.mxu1 %vm701_vm1, %v700_v10  ;;  %v158_v12 = vmul.f32 %v528_v11, %v54_v3  ;;  %v159_v13 = vmul.f32 %v528_v11, %v55_v9  ;;  %p670_p1 = scmp.ne.s32.totalorder %s513_s28, %s669_s29  ;;  %p675_p3 = scmp.lt.s32.totalorder %s669_s29, %s669_s29 }
  0x2b   :  { %558 = vmatpush3.msra.mxu0 %v61_v2 }
  0x2c   :  { %559 = vmatprep.subr.mxu0 %v60_v4  ;;  %v160_v14 = vsel %vm69_vm0, %v158_v12, 0.0  ;;  %v163_v15 = vsel %vm69_vm0, %v159_v13, 0.0  ;;  %p676_p4 = por %p675_p3, %p674_p2 }
  0x2d   :  { %560 = vmatpush3.msra.mxu0 %v60_v4  ;;  %161 = vadd.xlane.f32.xlu0 %v160_v14 }
  0x2e   :  { %561 = vmatprep.subr.mxu0 %v59_v5  ;;  %p677_p5 = pnand %p676_p4, %p670_p1 }
  0x2f   :  { %562 = vmatpush3.msra.mxu0 %v59_v5 }
  0x30   :  { %563 = vmatprep.subr.mxu0 %v58_v6 }
  0x31   :  { %564 = vmatpush3.msra.mxu0 %v58_v6  ;;  %164 = vadd.xlane.f32.xlu0 %v163_v15 }
  0x32   :  { %565 = vmatprep.subr.mxu0 %v57_v7 }
  0x33   :  { %566 = vmatpush3.msra.mxu0 %v57_v7 }
  0x34   :  { %567 = vmatprep.subr.mxu0 %v56_v8 }
  0x35   :  { %568 = vmatpush3.msra.mxu0 %v56_v8 }
  0x36   :  { %570 = vmatmul.mubr.msk.f32.vlgmr.msra.gmra.mxu0 %vm69_vm0, %v55_v9 }
  0xb6   :  { %v162_v24 = vpop.xlane.xlu0 %161 }
  0xba   :  { %v165_v28 = vpop.xlane.xlu0 %164 }
  0xf6   :  { %v571_v16 = vpop.f32.mrf.mxu0 }
  0xf7   :  { %v148_v20 = vadd.f32 %v571_v16, %v525_v17 }
  0xf8   :  { %v142_v18 = vpop.f32.mrf.mxu0 }
  0xf9   :  { %v143_v19 = vadd.f32 %v525_v17, %v142_v18  ;;  %v152_v22 = vmax.f32 %v148_v20, 0.0 }
  0xfb   :  { %575 = vmatmul.mubr.msk.f32.vlgmr.msra.gmra.mxu1 %vm69_vm0, %v143_v19  ;;  %v151_v21 = vmax.f32 %v143_v19, 0.0 }
  0xfc   :  { %578 = vmatpush3.xpose.msk.msra.mxu1 %vm69_vm0, %v55_v9  ;;  %579 = vmatprep.mubr.msk.f32.mxu1 %vm701_vm1, %v700_v10 }
  0xfd   :  { %352 = vrot.lane.b32.xlu1 %v151_v21, %s702_s0  ;;  %582 = vmatprep.subr.mxu1 %v700_v10 }
  0xff   :  { %580 = vmatmul.mubr.msk.f32.vlgmr.msra.gmra.mxu1 %vm69_vm0, %v148_v20 }
 0x100   :  { %584 = vmatprep.mubr.msk.f32.mxu1 %vm701_vm1, %v700_v10 }
 0x101   :  { %429 = vrot.lane.b32.xlu1 %v152_v22, %s702_s0 }
 0x16f   :  { %v353_v23 = vpop.permute.xlu1 %352 }
 0x170   :  { %583 = vmatpush3.msra.mxu1 %v353_v23 }
 0x171   :  { %587 = vmatprep.subr.mxu1 %v700_v10 }
 0x173   :  { %v430_v4 = vpop.permute.xlu1 %429 }
 0x1bb   :  { %v235_v25 = vpop.f32.mrf.mxu1 }
 0x1bc   :  { %v236_v26 = vadd.f32 %v235_v25, %v162_v24 }
 0x1bd   :  { %v576_v27 = vpop.f32.mrf.mxu1 }
 0x1be   :  { %v313_v29 = vsel %vm312_vm2, %v236_v26, -inf }
 0x1bf   :  { %v314_v30 = vrot.slane %v313_v29, 4  ;;  %v308_v31 = vpop.f32.mrf.mxu1 }
 0x1c0   :  { %v309_v32 = vadd.f32 %v308_v31, %v165_v28 }
 0x1c1   :  { %v315_v33 = vmax.f32 %v313_v29, %v314_v30  ;;  %v581_v34 = vpop.f32.mrf.mxu1 }
 0x1c2   :  { %v320_v35 = vsel %vm312_vm2, %v309_v32, -inf }
 0x1c3   :  { %v316_v36 = vrot.slane %v315_v33, 2  ;;  %v321_v37 = vrot.slane %v320_v35, 4 }
 0x1c5   :  { %v317_v38 = vmax.f32 %v315_v33, %v316_v36  ;;  %v322_v39 = vmax.f32 %v320_v35, %v321_v37 }
 0x1c7   :  { %v318_v40 = vrot.slane %v317_v38, 1  ;;  %v323_v41 = vrot.slane %v322_v39, 2 }
 0x1c9   :  { %v319_v42 = vmax.f32 %v317_v38, %v318_v40  ;;  %v324_v43 = vmax.f32 %v322_v39, %v323_v41 }
 0x1cb   :  { %v327_v44 = vsub.f32 %v236_v26, %v319_v42  ;;  %v325_v45 = vrot.slane %v324_v43, 1 }
 0x1cd   :  { %v329_v46 = vmul.f32 1.442695, %v327_v44  ;;  %v326_v47 = vmax.f32 %v324_v43, %v325_v45 }
 0x1cf   :  { %601 = vpow2.f32 %v329_v46  ;;  %v328_v48 = vsub.f32 %v309_v32, %v326_v47 }
 0x1d1   :  { %v331_v49 = vmul.f32 1.442695, %v328_v48 }
 0x1d3   :  { %603 = vpow2.f32 %v331_v49 }
 0x1dc   :  { %v602_v50 = vpop.eup %601 }
 0x1dd   :  { %v333_v51 = vsel %vm312_vm2, %v602_v50, 0.0 }
 0x1de   :  { %v334_v52 = vrot.slane %v333_v51, 4 }
 0x1e0   :  { %v604_v53 = vpop.eup %603  ;;  %v335_v54 = vadd.f32 %v334_v52, %v333_v51 }
 0x1e1   :  { %v340_v55 = vsel %vm312_vm2, %v604_v53, 0.0 }
 0x1e2   :  { %v336_v56 = vrot.slane %v335_v54, 2  ;;  %v341_v57 = vrot.slane %v340_v55, 4 }
 0x1e4   :  { %v337_v58 = vadd.f32 %v336_v56, %v335_v54  ;;  %v342_v59 = vadd.f32 %v341_v57, %v340_v55 }
 0x1e6   :  { %v338_v60 = vrot.slane %v337_v58, 1  ;;  %v343_v61 = vrot.slane %v342_v59, 2 }
 0x1e8   :  { %v339_v62 = vadd.f32 %v338_v60, %v337_v58  ;;  %v344_v63 = vadd.f32 %v343_v61, %v342_v59 }
 0x1ea   :  { %605 = vrcp.f32 %v339_v62  ;;  %v345_v0 = vrot.slane %v344_v63, 1 }
 0x1ec   :  { %v346_v1 = vadd.f32 %v345_v0, %v344_v63 }
 0x1ee   :  { %607 = vrcp.f32 %v346_v1 }
 0x1f7   :  { %v606_v2 = vpop.eup %605 }
 0x1f8   :  { %v349_v3 = vmul.f32 %v606_v2, %v602_v50 }
 0x1fa   :  { %585 = vmatmul.mubr.msk.f32.vlgmr.msra.gmra.mxu1 %vm312_vm2, %v349_v3 }
 0x1fb   :  { %v608_v5 = vpop.eup %607  ;;  %588 = vmatpush3.msra.mxu1 %v430_v4  ;;  %589 = vmatprep.mubr.msk.f32.mxu1 %vm701_vm1, %v700_v10 }
 0x1fc   :  { %v350_v6 = vmul.f32 %v608_v5, %v604_v53 }
 0x1fe   :  { %590 = vmatmul.mubr.msk.f32.vlgmr.msra.gmra.mxu1 %vm312_vm2, %v350_v6 }
 0x2ba   :  { %v424_v7 = vpop.f32.mrf.mxu1 }
 0x2bb   :  { %505 = vst.msk [vmem:[#allocation8] sm:$0xff] %vm69_vm0, %v424_v7 }
 0x2bc   :  { %v586_v8 = vpop.f32.mrf.mxu1 }
 0x2be   :  { %v501_v9 = vpop.f32.mrf.mxu1 }
 0x2bf   :  { %506 = vst.msk [vmem:[#allocation8 + $0x8] sm:$0xff] %vm69_vm0, %v501_v9 }
 0x2c0   :  { %v591_v11 = vpop.f32.mrf.mxu1 }
 0x2c1   :  { %680 = shalt.err (!%p677_p5)
}
 0x2c2   :  { %518 = dma.vmem_to_hbm [thread:$0]  %s513_s28, 256, %s776_s3, [#allocation4], %s697_s17, %s697_s17, %s698_s18  }
 0x2c3   :  { %693 = dma.done.wait [#allocation4], 256  }
 0x2c4   :  { %694 = vsyncadd [#allocation4], 4294967040 }
 0x2c5   :  { %522 = vsyncpa [#allocation3], 1 }
 0x2c6   :  { %523 = vsyncpa [#allocation6], 1 }
 0x2c7   :  { %524 = vsyncpa [#allocation4], 1 }

</bundles_post_ra>
